<compile_context>
chip_gen: v6e
topology: v6e:2x2x1
jax: 0.10.0
libtpu: 0.0.40
codegen_flags: <defaults>
</compile_context>

<pallas_src>
import jax
import jax.numpy as jnp
from jax.experimental import pallas as pl
from jax.experimental.pallas import tpu as pltpu

_LANE = 128
_SUBLANE = 8


def adapter_kernel(gp_ref, sfh_d_ref, sfh_b_ref, so_ref,
                   gp_out_ref, sfh_d_out_ref, sfh_b_out_ref):
    # --- pn_gp = GalaxyParameter -------------------------------------------------
    # hardtanh clip to [-1, 1], then affine map to [lb, ub]. Bounds are folded in
    # the wrapper to  out = offset + clip(gp) * scale  with
    #   scale = 0.5 * (ub - lb),  offset = lb + scale.
    # (When the gp stream is lane-packed, scale/offset are pre-tiled to match.)
    scale = so_ref[0:1, :]           # (1, gp_cols) -> broadcasts over the batch tile
    offset = so_ref[1:2, :]
    gp = jnp.clip(gp_ref[...], -1.0, 1.0)
    gp_out_ref[...] = offset + gp * scale

    # --- pn_sfh_* = VanillaGrid: normalised SFH grid via stable softmax ----------
    def _vanilla_grid(src_ref, dst_ref):
        x = src_ref[...]
        m = jnp.max(x, axis=-1, keepdims=True)
        e = jnp.exp(x - m)
        s = jnp.sum(e, axis=-1, keepdims=True)
        # Exact reciprocal: approx=True would break the 1e-5 sum-to-1 check.
        dst_ref[...] = e * pl.reciprocal(s, approx=False)

    _vanilla_grid(sfh_d_ref, sfh_d_out_ref)
    _vanilla_grid(sfh_b_ref, sfh_b_out_ref)


def _round_up(x, m):
    return ((x + m - 1) // m) * m


def _padded_block_bytes(rows, cols):
    """f32 VMEM footprint of a (rows, cols) block after (8, 128) tile padding."""
    return _round_up(max(rows, 1), _SUBLANE) * _round_up(cols, _LANE) * 4


def _vmem_needed_bytes(tb_eff, pack, gp_cols, n_sfh):
    gp_blk = _padded_block_bytes(tb_eff // pack, gp_cols)
    sfh_blk = _padded_block_bytes(tb_eff, n_sfh)
    so_blk = _padded_block_bytes(2, gp_cols)
    per_step = 2 * gp_blk + 4 * sfh_blk + so_blk    # gp in+out, 2 sfh streams in+out
    return 2 * per_step                             # double-buffered pipeline


def adapter_forward(gp, sfh_disk, sfh_bulge, lb, ub, *, tb=None, donate=False):
    """Pallas Adapter._apply_pn. Tiles over batch; feature (last) dims kept whole."""
    B, n_gp = gp.shape
    _, n_sfh = sfh_disk.shape

    gp = gp.astype(jnp.float32)
    sfh_disk = sfh_disk.astype(jnp.float32)
    sfh_bulge = sfh_bulge.astype(jnp.float32)

    # Fold per-parameter bounds into one tiny (2, gp_cols) constant slab.
    lb = jnp.asarray(lb, jnp.float32).reshape(1, n_gp)
    ub = jnp.asarray(ub, jnp.float32).reshape(1, n_gp)
    scale = 0.5 * (ub - lb)
    offset = lb + scale
    scale_offset = jnp.concatenate([scale, offset], axis=0)        # (2, n_gp)

    # Lane-dense GP path: pack `pack` batch rows into one 128-wide row. The reshape
    # is row-major contiguous (free). Requires B % pack == 0 and at least 8 packed
    # rows so the (8*k, 128) block never exceeds the packed array extent.
    pack = 1
    if 0 < n_gp < _LANE and _LANE % n_gp == 0:
        p = _LANE // n_gp
        if B % p == 0 and B >= _SUBLANE * p:
            pack = p
    if pack > 1:
        gp_cols = _LANE
        gp_in = gp.reshape(B // pack, gp_cols)
        scale_offset = jnp.tile(scale_offset, (1, pack))           # (2, 128)
    else:
        gp_cols = n_gp
        gp_in = gp

    # Batch tile: as large as VMEM allows (per-step overhead ~0.35 us), split into
    # >= 2 balanced grid steps so both TensorCores get work on v7x, aligned so the
    # packed gp block keeps (8, 128) tiling and no block exceeds the array extent
    # (other than standard masked partial tails).
    align = _SUBLANE * pack
    if tb is None:
        tb = 8192
    if B <= align:
        tb_eff = B                       # single full-extent block, grid = 1
    else:
        max_tile = (B // align) * align  # largest aligned tile <= B
        want = min(_round_up(tb, align), _round_up(pl.cdiv(B, 2), align))
        tb_eff = max(align, min(want, max_tile))

    # VMEM budget: account for lane padding explicitly and raise the scoped limit.
    try:
        info = pltpu.get_tpu_info()
        vmem_cap = int(getattr(info, "vmem_capacity_bytes", 64 << 20))
    except Exception:
        vmem_cap = 64 << 20              # conservative (v7x per-TC physical VMEM)
    vmem_cap_usable = int(0.75 * vmem_cap)
    headroom = 12 << 20
    while (tb_eff > align and
           _vmem_needed_bytes(tb_eff, pack, gp_cols, n_sfh) + headroom > vmem_cap_usable):
        tb_eff = max(align, _round_up(tb_eff // 2, align))
    vmem_limit = min(_vmem_needed_bytes(tb_eff, pack, gp_cols, n_sfh) + headroom,
                     vmem_cap_usable)
    vmem_limit = int(max(vmem_limit, 32 << 20))

    grid = (pl.cdiv(B, tb_eff),)
    batch_map = lambda i: (i, 0)
    const_map = lambda i: (0, 0)

    gp_block = (tb_eff // pack, gp_cols)
    gp_out_shape = (B // pack, gp_cols) if pack > 1 else (B, n_gp)

    extra_kwargs = {}
    if donate:
        # Callers that can donate gp/sfh buffers avoid separate output allocations.
        extra_kwargs["input_output_aliases"] = {0: 0, 1: 1, 2: 2}

    gp_o, sfh_d_o, sfh_b_o = pl.pallas_call(
        adapter_kernel,
        out_shape=(
            jax.ShapeDtypeStruct(gp_out_shape, jnp.float32),
            jax.ShapeDtypeStruct((B, n_sfh), jnp.float32),
            jax.ShapeDtypeStruct((B, n_sfh), jnp.float32),
        ),
        grid_spec=pltpu.PrefetchScalarGridSpec(
            num_scalar_prefetch=0,
            grid=grid,
            in_specs=[
                pl.BlockSpec(gp_block, batch_map),
                pl.BlockSpec((tb_eff, n_sfh), batch_map),
                pl.BlockSpec((tb_eff, n_sfh), batch_map),
                pl.BlockSpec((2, gp_cols), const_map),     # (scale, offset), tiny
            ],
            out_specs=[
                pl.BlockSpec(gp_block, batch_map),
                pl.BlockSpec((tb_eff, n_sfh), batch_map),
                pl.BlockSpec((tb_eff, n_sfh), batch_map),
            ],
        ),
        compiler_params=pltpu.CompilerParams(
            dimension_semantics=("parallel",),   # shard batch steps across TCs (v7x)
            vmem_limit_bytes=vmem_limit,
        ),
        **extra_kwargs,
    )(gp_in, sfh_disk, sfh_bulge, scale_offset)

    if pack > 1:
        gp_o = gp_o.reshape(B, n_gp)
    return gp_o, sfh_d_o, sfh_b_o


if __name__ == "__main__":
    N_GP, N_SFH = 8, 40               # small shapes; N_SFH ~ n_tau * n_met grid

    def _reference(gp, sfh_disk, sfh_bulge, lb, ub):
        gp_r = lb + 0.5 * (jnp.clip(gp, -1.0, 1.0) + 1.0) * (ub - lb)
        return gp_r, jax.nn.softmax(sfh_disk, axis=-1), jax.nn.softmax(sfh_bulge, axis=-1)

    key = jax.random.PRNGKey(0)
    # deterministic GalaxyParameter bounds (would come from helper/lib_ssp in starduster)
    idx = jnp.arange(N_GP, dtype=jnp.float32)
    lb = (-2.0 + 0.1 * idx).reshape(1, N_GP)
    ub = lb + 1.0 + 0.05 * idx.reshape(1, N_GP)

    # (B, tb) cases:
    #   (16, None)  -> tiny batch, unpacked fallback, auto tile, 2 balanced steps
    #   (256, 128)  -> lane-packed gp path ((16,128) packed array), grid = 2
    #   (300, 128)  -> ragged batch (B % 16 != 0), unpacked path, masked tail block
    for B, tb in ((16, None), (256, 128), (300, 128)):
        k1, k2, k3 = jax.random.split(jax.random.fold_in(key, B), 3)
        # free parameters: gp in roughly [-1.5, 1.5] to exercise the hardtanh clip
        gp = jax.random.uniform(k1, (B, N_GP), jnp.float32, minval=-1.5, maxval=1.5)
        sfh_disk = jax.random.normal(k2, (B, N_SFH), dtype=jnp.float32)
        sfh_bulge = jax.random.normal(k3, (B, N_SFH), dtype=jnp.float32)

        gp_o, sfh_d_o, sfh_b_o = adapter_forward(gp, sfh_disk, sfh_bulge, lb, ub, tb=tb)
        jax.block_until_ready((gp_o, sfh_d_o, sfh_b_o))

        # --- check_sfh_norm (as in Adapter._apply_pn) ---
        msg = "Star formation history must be normalised to one."
        assert jnp.allclose(sfh_d_o.sum(axis=-1), 1.0, atol=1e-5), msg
        assert jnp.allclose(sfh_b_o.sum(axis=-1), 1.0, atol=1e-5), msg

        # --- reference check against plain-JAX forward ---
        gp_r, sfh_d_r, sfh_b_r = _reference(gp, sfh_disk, sfh_bulge, lb, ub)
        assert jnp.allclose(gp_o, gp_r, atol=1e-5)
        assert jnp.allclose(sfh_d_o, sfh_d_r, atol=1e-5)
        assert jnp.allclose(sfh_b_o, sfh_b_r, atol=1e-5)

    print("KERNEL_OK")
</pallas_src>

<mosaic_0001>
module attributes {stable_mosaic.version = 11 : i64} {
  func.func @adapter_kernel(%arg0: i32, %arg1: memref<8x8xf32, #tpu.memory_space<vmem>>, %arg2: memref<8x40xf32, #tpu.memory_space<vmem>>, %arg3: memref<8x40xf32, #tpu.memory_space<vmem>>, %arg4: memref<2x8xf32, #tpu.memory_space<vmem>>, %arg5: memref<8x8xf32, #tpu.memory_space<vmem>>, %arg6: memref<8x40xf32, #tpu.memory_space<vmem>>, %arg7: memref<8x40xf32, #tpu.memory_space<vmem>>) attributes {dimension_semantics = [#tpu.dimension_semantics<parallel>], iteration_bounds = array<i64: 2>, scalar_prefetch = 0 : i64, scratch_operands = 0 : i64, tpu.core_type = #tpu.core_type<tc>, window_params = [{transform_indices = @transform_0, window_bounds = array<i64: 8, 8>}, {transform_indices = @transform_1, window_bounds = array<i64: 8, 40>}, {transform_indices = @transform_2, window_bounds = array<i64: 8, 40>}, {pipeline_mode = #tpu.pipeline_mode<synchronous>, transform_indices = @transform_3, window_bounds = array<i64: 2, 8>}, {transform_indices = @transform_4, window_bounds = array<i64: 8, 8>}, {transform_indices = @transform_5, window_bounds = array<i64: 8, 40>}, {transform_indices = @transform_6, window_bounds = array<i64: 8, 40>}]} {
    %c0 = arith.constant 0 : index
    %c0_0 = arith.constant 0 : index
    %0 = vector.load %arg4[%c0, %c0_0] : memref<2x8xf32, #tpu.memory_space<vmem>>, vector<1x8xf32>
    %c1 = arith.constant 1 : index
    %c0_1 = arith.constant 0 : index
    %1 = vector.load %arg4[%c1, %c0_1] : memref<2x8xf32, #tpu.memory_space<vmem>>, vector<1x8xf32>
    %c0_2 = arith.constant 0 : index
    %c0_3 = arith.constant 0 : index
    %2 = vector.load %arg1[%c0_2, %c0_3] : memref<8x8xf32, #tpu.memory_space<vmem>>, vector<8x8xf32>
    %cst = arith.constant -1.000000e+00 : f32
    %cst_4 = arith.constant 1.000000e+00 : f32
    %3 = vector.broadcast %cst : f32 to vector<8x8xf32>
    %4 = arith.maximumf %3, %2 : vector<8x8xf32>
    %5 = vector.broadcast %cst_4 : f32 to vector<8x8xf32>
    %6 = arith.minimumf %5, %4 : vector<8x8xf32>
    %7 = vector.broadcast %0 : vector<1x8xf32> to vector<8x8xf32>
    %8 = arith.mulf %6, %7 : vector<8x8xf32>
    %9 = vector.broadcast %1 : vector<1x8xf32> to vector<8x8xf32>
    %10 = arith.addf %9, %8 : vector<8x8xf32>
    %c0_5 = arith.constant 0 : index
    %c0_6 = arith.constant 0 : index
    %11 = vector.load %arg5[%c0_5, %c0_6] : memref<8x8xf32, #tpu.memory_space<vmem>>, vector<8x8xf32>
    tpu.vector_store %arg5[%c0_5, %c0_6], %10 {strides = array<i32>} : memref<8x8xf32, #tpu.memory_space<vmem>>, vector<8x8xf32>,
    %c0_7 = arith.constant 0 : index
    %c0_8 = arith.constant 0 : index
    %12 = vector.load %arg2[%c0_7, %c0_8] : memref<8x40xf32, #tpu.memory_space<vmem>>, vector<8x40xf32>
    %cst_9 = arith.constant dense<0xFF800000> : vector<8xf32>
    %13 = vector.multi_reduction <maximumf>, %12, %cst_9 [1] : vector<8x40xf32> to vector<8xf32>
    %14 = vector.shape_cast %13 : vector<8xf32> to vector<8x1xf32>
    %15 = vector.broadcast %14 : vector<8x1xf32> to vector<8x40xf32>
    %16 = arith.subf %12, %15 : vector<8x40xf32>
    %17 = math.exp %16 : vector<8x40xf32>
    %cst_10 = arith.constant dense<0.000000e+00> : vector<8xf32>
    %18 = vector.multi_reduction <add>, %17, %cst_10 [1] : vector<8x40xf32> to vector<8xf32>
    %19 = vector.shape_cast %18 : vector<8xf32> to vector<8x1xf32>
    %20 = tpu.reciprocal %19 : vector<8x1xf32> -> vector<8x1xf32>
    %21 = vector.broadcast %20 : vector<8x1xf32> to vector<8x40xf32>
    %22 = arith.mulf %17, %21 : vector<8x40xf32>
    %c0_11 = arith.constant 0 : index
    %c0_12 = arith.constant 0 : index
    %23 = vector.load %arg6[%c0_11, %c0_12] : memref<8x40xf32, #tpu.memory_space<vmem>>, vector<8x40xf32>
    tpu.vector_store %arg6[%c0_11, %c0_12], %22 {strides = array<i32>} : memref<8x40xf32, #tpu.memory_space<vmem>>, vector<8x40xf32>,
    %c0_13 = arith.constant 0 : index
    %c0_14 = arith.constant 0 : index
    %24 = vector.load %arg3[%c0_13, %c0_14] : memref<8x40xf32, #tpu.memory_space<vmem>>, vector<8x40xf32>
    %cst_15 = arith.constant dense<0xFF800000> : vector<8xf32>
    %25 = vector.multi_reduction <maximumf>, %24, %cst_15 [1] : vector<8x40xf32> to vector<8xf32>
    %26 = vector.shape_cast %25 : vector<8xf32> to vector<8x1xf32>
    %27 = vector.broadcast %26 : vector<8x1xf32> to vector<8x40xf32>
    %28 = arith.subf %24, %27 : vector<8x40xf32>
    %29 = math.exp %28 : vector<8x40xf32>
    %cst_16 = arith.constant dense<0.000000e+00> : vector<8xf32>
    %30 = vector.multi_reduction <add>, %29, %cst_16 [1] : vector<8x40xf32> to vector<8xf32>
    %31 = vector.shape_cast %30 : vector<8xf32> to vector<8x1xf32>
    %32 = tpu.reciprocal %31 : vector<8x1xf32> -> vector<8x1xf32>
    %33 = vector.broadcast %32 : vector<8x1xf32> to vector<8x40xf32>
    %34 = arith.mulf %29, %33 : vector<8x40xf32>
    %c0_17 = arith.constant 0 : index
    %c0_18 = arith.constant 0 : index
    %35 = vector.load %arg7[%c0_17, %c0_18] : memref<8x40xf32, #tpu.memory_space<vmem>>, vector<8x40xf32>
    tpu.vector_store %arg7[%c0_17, %c0_18], %34 {strides = array<i32>} : memref<8x40xf32, #tpu.memory_space<vmem>>, vector<8x40xf32>,
    return
  }
  func.func @transform_0(%arg0: i32) -> (i32, i32) {
    %c0_i32 = arith.constant 0 : i32
    %c0_i32_0 = arith.constant 0 : i32
    return %arg0, %c0_i32 : i32, i32
  }
  func.func @transform_1(%arg0: i32) -> (i32, i32) {
    %c0_i32 = arith.constant 0 : i32
    %c0_i32_0 = arith.constant 0 : i32
    return %arg0, %c0_i32 : i32, i32
  }
  func.func @transform_2(%arg0: i32) -> (i32, i32) {
    %c0_i32 = arith.constant 0 : i32
    %c0_i32_0 = arith.constant 0 : i32
    return %arg0, %c0_i32 : i32, i32
  }
  func.func @transform_3(%arg0: i32) -> (i32, i32) {
    %c0_i32 = arith.constant 0 : i32
    %c0_i32_0 = arith.constant 0 : i32
    %c0_i32_1 = arith.constant 0 : i32
    return %c0_i32, %c0_i32_0 : i32, i32
  }
  func.func @transform_4(%arg0: i32) -> (i32, i32) {
    %c0_i32 = arith.constant 0 : i32
    %c0_i32_0 = arith.constant 0 : i32
    return %arg0, %c0_i32 : i32, i32
  }
  func.func @transform_5(%arg0: i32) -> (i32, i32) {
    %c0_i32 = arith.constant 0 : i32
    %c0_i32_0 = arith.constant 0 : i32
    return %arg0, %c0_i32 : i32, i32
  }
  func.func @transform_6(%arg0: i32) -> (i32, i32) {
    %c0_i32 = arith.constant 0 : i32
    %c0_i32_0 = arith.constant 0 : i32
    return %arg0, %c0_i32 : i32, i32
  }
}

</mosaic_0001>

<bundles_post_ra>
// kernel: tpu_custom_call.1
= control target key start
LH: loop header
LB: loop body
LE: loop exit
PB: predicated region body
PF: predicated region fallthrough
CT: control target
= control target key end

     0   :  { %12 = vsyncpa [#allocation3], 0  ;;  %s1005_s0 = inlined_call_operand.vmem [shape: f32[16,8], index: 0, kind: input, shape index: {}]   ;;  %s1006_s1 = inlined_call_operand.vmem [shape: f32[16,40], index: 1, kind: input, shape index: {}]   ;;  %s1007_s2 = inlined_call_operand.hbm [shape: f32[16,40], index: 2, kind: input, shape index: {}]   ;;  %s1008_s3 = inlined_call_operand.vmem [shape: f32[2,8], index: 3, kind: input, shape index: {}]   ;;  %s1009_s4 = inlined_call_operand.vmem [shape: f32[16,8], index: 4, kind: output, shape index: {0}]   ;;  %s1010_s5 = inlined_call_operand.hbm [shape: f32[16,40], index: 5, kind: output, shape index: {1}]   ;;  %s1011_s6 = inlined_call_operand.hbm [shape: f32[16,40], index: 6, kind: output, shape index: {2}]  }
   0x1   :  { %14 = vsyncpa [#allocation3 + $0x1], 0 }
   0x2   :  { %15 = vsyncpa [#allocation4], 0 }
   0x3   :  { %17 = vsyncpa [#allocation4 + $0x1], 0 }
   0x4   :  { %18 = vsyncpa [#allocation7], 0 }
   0x5   :  { %20 = vsyncpa [#allocation7 + $0x1], 0  ;;  %s797_s21 = smov 0   ;;  %s799_s22 = smov 0  }
   0x6   :  { %s801_s23 = smov 0   ;;  %s803_s24 = smov 0  }
   0x7 LB: > { %s818_s25 = sadd.s32 4294967295, %s757_s24   ;;  %s555_s26 = sadd.s32 4294967294, %s757_s24   ;;  %s757_s24 = sphi %s803_s24, %s1032_s24   ;;  %s753_s23 = sphi %s801_s23, %s1031_s23   ;;  %s749_s22 = sphi %s799_s22, %s1030_s22   ;;  %s745_s21 = sphi %s797_s21, %s1029_s21  }
   0x8   : > { %s822_s27 = sadd.s32 1, %s757_s24   ;;  %s85_s28 = sadd.s32 1, %s753_s23 }
   0x9   : > { %s82_s29 = ssub.s32 %s757_s24, %s822_s27  ;;  %p92_p0 = scmp.ne.s32.totalorder %s753_s23, %s749_s22 }
   0xa   : > { %p83_p1 = scmp.eq.s32.totalorder %s82_s29, 0  ;;  %p93_p2 = scmp.eq.s32.totalorder %s757_s24, 0 }
   0xb   : > { %p98_p3 = scmp.ne.s32.totalorder %s749_s22, %s745_s21  ;;  %p99_p4 = scmp.eq.s32.totalorder %s818_s25, 0 }
   0xc   : > { %s834_s30 = scalar_select %p83_p1, %s753_s23, %s85_s28  }
   0xd   : > { %p836_p5 = por %p93_p2, %p92_p0  ;;  %p840_p6 = por %p99_p4, %p98_p3 }
   0xe   : > { %p169_p7 = scmp.eq.s32.totalorder %s818_s25, 1  ;;  %p175_p8 = scmp.eq.s32.totalorder %s555_s26, 1 }
   0xf   : > { %s1017_s8 = scalar_select %p840_p6, 1, 0 }
  0x10   : > { %p593_p10 = scmp.lt.s32.totalorder %s757_s24, 2  ;;  %p847_p11 = por %p169_p7, %p92_p0 }
  0x11   : > { %p851_p12 = por %p175_p8, %p98_p3  ;;  %s238_s11 = sand.u32 1, %s753_s23  }
  0x12   : > { %s1018_s9 = scalar_select %p847_p11, 1, 0 }
  0x13   : > { %s1019_s10 = scalar_select %p851_p12, 1, 0 }
  0x14   : > { %s559_s12 = sshll.u32 %s757_s24, 7  ;;  %s558_s13 = sshll.u32 %s238_s11, 3 }
  0x15   : > { %s860_s16 = scalar_lea.hbm %s1007_s2, %s559_s12  ;;  %s242_s17 = scalar_lea.vmem [#allocation2], %s558_s13 }
  0x16   : > { %s249_s18 = sshll.u32 %s242_s17, 4  ;;  %p864_p13 = pnand %p593_p10, %p836_p5  ;;  %s868_s18 = int_to_ptr.vmem [resolvable:$true] %s249_s18 }
  0x17   : > { %s239_s20 = scalar_lea.sflag [#allocation3], %s238_s11  ;;  %s635_s26 = scalar_lea.hbm %s860_s16, 128 }
  0x18   : > { %p636_p2 = scmp.ne.s32.totalorder %s860_s16, %s635_s26  ;;  %p637_p3 = pneg %p864_p13 }
  0x19   : > { %s640_s7 = scalar_lea.hbm %s1007_s2, 256  ;;  %p641_p5 = scmp.lt.s32.totalorder %s860_s16, %s1007_s2 }
  0x1a   : > { %p638_p4 = pnand %p637_p3, %p636_p2  ;;  %p642_p8 = scmp.lt.s32.totalorder %s640_s7, %s635_s26 }
  0x1c   : > { %p639_p7 = pneg %p638_p4  ;;  %p643_p10 = por %p642_p8, %p641_p5 }
  0x1e   : > { %p644_p9 = pnand %p643_p10, %p639_p7 }
  0x20   : > { %647 = shalt.err (!%p644_p9)
}
  0x21   : > { %s648_s11 = scalar_lea.vmem %s868_s18, 128  ;;  %s759_s14 = smov [#allocation2]  }
  0x22   : > { %p649_p0 = scmp.ne.s32.totalorder %s868_s18, %s648_s11  ;;  %s653_s15 = sshll.u32 %s759_s14, 4  ;;  %s654_s15 = int_to_ptr.vmem [resolvable:$false] %s653_s15 }
  0x23   : > { %s655_s17 = scalar_lea.vmem %s654_s15, 256  ;;  %p656_p4 = scmp.lt.s32.totalorder %s868_s18, %s654_s15 }
  0x24   : > { %p651_p1 = pnand %p649_p0, %p637_p3  ;;  %p657_p12 = scmp.lt.s32.totalorder %s655_s17, %s648_s11 }
  0x26   : > { %p652_p2 = pneg %p651_p1  ;;  %p658_p11 = por %p657_p12, %p656_p4 }
  0x28   : > { %p659_p6 = pnand %p658_p11, %p652_p2 }
  0x2a   : > { %662 = shalt.err (!%p659_p6)
}
  0x2b   : > { %585 = dma.hbm_to_vmem [thread:$0]  (!%p864_p13), %s860_s16, 128, %s868_s18, %s239_s20  }
  0x2c   : > { %p1021_p9 = scmp.lt.s32.totalorder %s757_s24, 3  ;;  %p1022_p7 = scmp.ge.s32.totalorder %s757_s24, 1 }
  0x2e   : > { %p255_p0 = pnand %p1022_p7, %p1021_p9 }
  0x2f   : > { %s895_s26 = sand.u32 (!%p255_p0), 1, %s749_s22   ;;  %p1023_p6 = scmp.ne.s32.totalorder (!%p255_p0), %s1017_s8, 0 }
  0x30   : > { %258 = sbr.rel (%p255_p0) target bundleno = 410 (0x19a), region = 36  ;;  %s898_s28 = sshll.u32 (!%p255_p0), %s895_s26, 3 }
  0x31   : > { %s261_s29 = scalar_lea.sflag (!%p255_p0), [#allocation3], %s895_s26  ;;  %s264_s19 = scalar_lea.vmem (!%p255_p0), [#allocation2], %s898_s28 }
  0x35   : > { %732 = dma.done.wait (%p1023_p6), %s261_s29, 128  }
  0x36   : > { %734 = vsyncadd (%p1023_p6), %s261_s29, 4294967168  ;;  %p310_p11 = scmp.lt.s32.totalorder %s818_s25, 1  ;;  %vm340_vm0 = vcmask 326656   ;;  %v568_v2 = vld [vmem:[%s1008_s3] ss:$0 sm:$0xff]  ;;  %vm337_vm1 = vcmask 64512  }
  0x37   : > { %v353_v4 = vld [vmem:[%s264_s19] sm:$0xff]  ;;  %s1015_s19 = sshll.u32 %s818_s25, 7  ;;  %s1014_s15 = scalar_lea.vmem [#allocation6], %s898_s28 }
  0x38   : > { %s311_s16 = scalar_select %p310_p11, %s818_s25, 1  ;;  %v569_v6 = vld [vmem:[%s1008_s3 + $0x1] ss:$0 sm:$0xff]  ;;  %v354_v7 = vsel %vm340_vm0, %v353_v4, -inf }
  0x39   : > { %s941_s8 = sshll.u32 %s1014_s15, 4  ;;  %s371_s17 = scalar_lea.sflag [#allocation4], %s895_s26  ;;  %s406_s8 = int_to_ptr.vmem [resolvable:$true] %s941_s8 }
  0x3a   : > { %s564_s18 = sshll.u32 %s311_s16, 3  ;;  %p1024_p13 = scmp.ne.s32.totalorder %s1018_s9, 0 }
  0x3b   : > { %s313_s12 = scalar_lea.vmem %s1005_s0, %s564_s18  ;;  %s317_s14 = scalar_lea.vmem %s1006_s1, %s564_s18 }
  0x3c   : > { %v339_v0 = vld [vmem:[%s317_s14] sm:$0xff]  ;;  %s321_s7 = scalar_lea.vmem %s1009_s4, %s564_s18  ;;  %s302_s18 = scalar_lea.vmem [#allocation5], %s898_s28 }
  0x3d   : > { %v341_v1 = vsel %vm340_vm0, %v339_v0, -inf  ;;  %v324_v3 = vld [vmem:[%s313_s12] sm:$0xff]  ;;  %s392_s12 = sshll.u32 %s302_s18, 4  ;;  %s934_s14 = scalar_lea.hbm %s1010_s5, %s1015_s19  ;;  %s936_s12 = int_to_ptr.vmem [resolvable:$true] %s392_s12 }
  0x3e   : > { %342 = vmax.xlane.f32.xlu0 %v341_v1  ;;  %v567_v5 = vclamps-f32 %v324_v3, 1.0  ;;  %s663_s29 = scalar_lea.vmem %s936_s12, 128  ;;  %s760_s16 = smov [#allocation5]  }
  0x3f   : > { %p664_p12 = scmp.ne.s32.totalorder %s936_s12, %s663_s29  ;;  %s667_s20 = sshll.u32 %s760_s16, 4  ;;  %s668_s20 = int_to_ptr.vmem [resolvable:$false] %s667_s20 }
  0x40   : > { %v331_v8 = vmul.f32 %v568_v2, %v567_v5  ;;  %p670_p5 = scmp.lt.s32.totalorder %s936_s12, %s668_s20 }
  0x41   : > { %p665_p1 = pnand %p664_p12, %p1024_p13 }
  0x42   : > { %v336_v9 = vadd.f32 %v569_v6, %v331_v8  ;;  %355 = vmax.xlane.f32.xlu0 %v354_v7 }
  0x43   : > { %p666_p3 = pneg %p665_p1 }
  0x44   : > { %338 = vst.msk [vmem:[%s321_s7] sm:$0xff] %vm337_vm1, %v336_v9  ;;  %s669_s7 = scalar_lea.vmem %s668_s20, 256 }
  0x45   : > { %p671_p8 = scmp.lt.s32.totalorder %s669_s7, %s663_s29 }
  0x47   : > { %p672_p10 = por %p671_p8, %p670_p5 }
  0x49   : > { %p673_p2 = pnand %p672_p10, %p666_p3 }
  0xc7   : > { %v343_v10 = vpop.xlane.xlu0 %342 }
  0xc8   : > { %v344_v11 = vsub.f32 %v339_v0, %v343_v10 }
  0xca   : > { %v345_v12 = vmul.f32 1.442695, %v344_v11 }
  0xcb   : > { %v356_v13 = vpop.xlane.xlu0 %355 }
  0xcc   : > { %627 = vpow2.f32 %v345_v12  ;;  %v357_v14 = vsub.f32 %v353_v4, %v356_v13 }
  0xce   : > { %v358_v15 = vmul.f32 1.442695, %v357_v14 }
  0xd0   : > { %629 = vpow2.f32 %v358_v15 }
  0xd9   : > { %v628_v16 = vpop.eup %627 }
  0xda   : > { %v347_v17 = vsel %vm340_vm0, %v628_v16, 0.0 }
  0xdb   : > { %348 = vadd.xlane.f32.xlu1 %v347_v17 }
  0xdd   : > { %v630_v18 = vpop.eup %629 }
  0xde   : > { %v360_v19 = vsel %vm340_vm0, %v630_v18, 0.0 }
  0xdf   : > { %361 = vadd.xlane.f32.xlu1 %v360_v19 }
 0x164   : > { %v349_v20 = vpop.xlane.xlu1 %348 }
 0x165   : > { %631 = vrcp.f32 %v349_v20 }
 0x168   : > { %v362_v21 = vpop.xlane.xlu1 %361 }
 0x169   : > { %633 = vrcp.f32 %v362_v21 }
 0x172   : > { %v632_v22 = vpop.eup %631 }
 0x173   : > { %v351_v23 = vmul.f32 %v632_v22, %v628_v16 }
 0x175   : > { %352 = vst.msk [vmem:[%s302_s18] sm:$0xff] %vm340_vm0, %v351_v23 }
 0x176   : > { %v634_v24 = vpop.eup %633 }
 0x177   : > { %676 = shalt.err (!%p673_p2)
}
 0x178   : > { %s677_s18 = scalar_lea.hbm %s934_s14, 128  ;;  %s681_s16 = scalar_lea.hbm %s1010_s5, 256 }
 0x179   : > { %p678_p4 = scmp.ne.s32.totalorder %s934_s14, %s677_s18  ;;  %p682_p0 = scmp.lt.s32.totalorder %s934_s14, %s1010_s5 }
 0x17a   : > { %p683_p6 = scmp.lt.s32.totalorder %s681_s16, %s677_s18 }
 0x17b   : > { %p679_p9 = pnand %p678_p4, %p1024_p13 }
 0x17c   : > { %p684_p11 = por %p683_p6, %p682_p0 }
 0x17d   : > { %p680_p7 = pneg %p679_p9 }
 0x17f   : > { %p685_p12 = pnand %p684_p11, %p680_p7 }
 0x181   : > { %688 = shalt.err (!%p685_p12)
}
 0x182   : > { %578 = dma.vmem_to_hbm [thread:$0]  (%p1024_p13), %s936_s12, 128, %s934_s14, %s371_s17   ;;  %v364_v25 = vmul.f32 %v634_v24, %v630_v18 }
 0x183   : > { %s1025_s29 = sshll.u32 %s818_s25, 7  ;;  %s1026_s15 = scalar_lea.vmem [#allocation6], %s898_s28 }
 0x184   : > { %s403_s19 = scalar_lea.hbm %s1011_s6, %s1025_s29  ;;  %365 = vst.msk [vmem:[%s1026_s15] sm:$0xff] %vm340_vm0, %v364_v25  ;;  %s376_s18 = scalar_lea.sflag [#allocation7], %s895_s26 }
 0x185   : > { %s689_s13 = scalar_lea.vmem %s406_s8, 128  ;;  %s761_s11 = smov [#allocation6]  }
 0x186   : > { %p690_p1 = scmp.ne.s32.totalorder %s406_s8, %s689_s13  ;;  %s693_s16 = sshll.u32 %s761_s11, 4  ;;  %s694_s16 = int_to_ptr.vmem [resolvable:$false] %s693_s16 }
 0x187   : > { %s695_s12 = scalar_lea.vmem %s694_s16, 256  ;;  %p696_p8 = scmp.lt.s32.totalorder %s406_s8, %s694_s16 }
 0x188   : > { %p691_p3 = pnand %p690_p1, %p1024_p13  ;;  %p697_p10 = scmp.lt.s32.totalorder %s695_s12, %s689_s13 }
 0x18a   : > { %p692_p5 = pneg %p691_p3  ;;  %p698_p2 = por %p697_p10, %p696_p8 }
 0x18c   : > { %p699_p4 = pnand %p698_p2, %p692_p5 }
 0x18e   : > { %702 = shalt.err (!%p699_p4)
}
 0x18f   : > { %s703_s25 = scalar_lea.hbm %s403_s19, 128  ;;  %s707_s14 = scalar_lea.hbm %s1011_s6, 256 }
 0x190   : > { %p704_p9 = scmp.ne.s32.totalorder %s403_s19, %s703_s25  ;;  %p708_p6 = scmp.lt.s32.totalorder %s403_s19, %s1011_s6 }
 0x191   : > { %p709_p11 = scmp.lt.s32.totalorder %s707_s14, %s703_s25 }
 0x192   : > { %p705_p7 = pnand %p704_p9, %p1024_p13 }
 0x193   : > { %p710_p12 = por %p709_p11, %p708_p6 }
 0x194   : > { %p706_p0 = pneg %p705_p7 }
 0x196   : > { %p711_p1 = pnand %p710_p12, %p706_p0 }
 0x198   : > { %714 = shalt.err (!%p711_p1)
}
 0x199   : > { %579 = dma.vmem_to_hbm [thread:$0]  (%p1024_p13), %s406_s8, 128, %s403_s19, %s376_s18  }
 0x19a PF: > { %s424_s20 = sand.u32 1, %s745_s21   ;;  %p1027_p3 = scmp.ne.s32.totalorder %s1019_s10, 0 }
 0x19b   : > { %p1028_p5 = scmp.ge.s32.totalorder %s757_s24, 2  ;;  %s425_s7 = scalar_lea.sflag [#allocation4], %s424_s20 }
 0x19d   : > { %p587_p8 = pnand %p1028_p5, %p1027_p3 }
 0x19f   : > { %p588_p10 = pneg %p587_p8 }
 0x1a1   : > { %736 = dma.done.wait (%p588_p10), %s425_s7, 128  }
 0x1a2   : > { %738 = vsyncadd (%p588_p10), %s425_s7, 4294967168  ;;  %s434_s15 = scalar_lea.sflag [#allocation7], %s424_s20 }
 0x1a3   : > { %740 = dma.done.wait (%p588_p10), %s434_s15, 128  }
 0x1a4   : > { %742 = vsyncadd (%p588_p10), %s434_s15, 4294967168  ;;  %p23_p13 = scmp.ge.s32.totalorder %s822_s27, 4   ;;  %s1029_s21 = smov %s749_s22 }
 0x1a5   : > { %s1030_s22 = smov %s753_s23  ;;  %s1031_s23 = smov %s834_s30 }
 0x1a6   : > { %s1032_s24 = smov %s822_s27  ;;  %25 = sbr.rel (!%p23_p13) target bundleno = 7 (0x7), region = 116 }
 0x1ab   :  { %439 = vsyncpa [#allocation3], 1 }
 0x1ac   :  { %441 = vsyncpa [#allocation3 + $0x1], 1 }
 0x1ad   :  { %442 = vsyncpa [#allocation4], 1 }
 0x1ae   :  { %444 = vsyncpa [#allocation4 + $0x1], 1 }
 0x1af   :  { %445 = vsyncpa [#allocation7], 1 }
 0x1b0   :  { %447 = vsyncpa [#allocation7 + $0x1], 1 }

</bundles_post_ra>
